<compile_context>
chip_gen: v7x
topology: tpu7x:2x2x1
jax: 0.10.0
libtpu: 0.0.40
codegen_flags: <defaults>
</compile_context>

<pallas_src>
import math

import jax
import jax.numpy as jnp
from jax import lax
from jax.experimental import pallas as pl
from jax.experimental.pallas import tpu as pltpu


NH_ROWS = 8  # transposed fused-head rows: 0 = gamma, 1 = value, 2..7 = zero padding


def _round_up(x, m):
    return ((x + m - 1) // m) * m


# ----------------------------------------------------------------------------- kernel
def _dual_head_kernel(obs_ref, w1_ref, b1_ref, w2_ref, b2_ref,
                      whT_ref, bhT_ref, out_ref):
    # Cast obs f32 -> bf16 in-kernel (VPU work, hidden under the MXU).
    obs = obs_ref[...].astype(jnp.bfloat16)

    # Backbone layer 1: Linear(obs_dim -> hidden) + ReLU  (bf16 MXU, f32 accumulate).
    h1 = jnp.dot(obs, w1_ref[...], preferred_element_type=jnp.float32)
    h1 = jnp.maximum(h1 + b1_ref[...], 0.0)

    # Backbone layer 2: Linear(hidden -> hidden) + ReLU.
    h2 = jnp.dot(h1.astype(jnp.bfloat16), w2_ref[...],
                 preferred_element_type=jnp.float32)
    h2 = jnp.maximum(h2 + b2_ref[...], 0.0)

    # Fused, transposed heads: (NH_ROWS, hidden) x (TB, hidden)^T -> (NH_ROWS, TB).
    # Batch is on the 128-lane axis -> lane-dense, unmasked output stores.
    head = lax.dot_general(whT_ref[...], h2.astype(jnp.bfloat16),
                           dimension_numbers=(((1,), (1,)), ((), ())),
                           preferred_element_type=jnp.float32)
    head = head + bhT_ref[...]

    # sigmoid only on the gamma row (row 0); value row and zero-pad rows stay linear.
    gamma = jax.nn.sigmoid(head[0:1, :])
    out_ref[...] = jnp.concatenate([gamma, head[1:, :]], axis=0).astype(out_ref.dtype)


# ---------------------------------------------------------------------------- wrapper
def prepare_params(params):
    """One-time host-side prep: cast weights to bf16 (MXU-native) and fuse the two
    width-1 heads into a single transposed (NH_ROWS, hidden) weight so the kernel
    emits one lane-dense output slab.  Biases stay f32."""
    obs_dim, hidden = params["w1"].shape
    w1 = params["w1"].astype(jnp.bfloat16)
    b1 = params["b1"].astype(jnp.float32)
    w2 = params["w2"].astype(jnp.bfloat16)
    b2 = params["b2"].astype(jnp.float32)

    whT = jnp.zeros((NH_ROWS, hidden), jnp.bfloat16)
    whT = whT.at[0, :].set(params["wg"][:, 0].astype(jnp.bfloat16))
    whT = whT.at[1, :].set(params["wv"][:, 0].astype(jnp.bfloat16))
    bhT = jnp.zeros((NH_ROWS, 1), jnp.float32)
    bhT = bhT.at[0, 0].set(params["bg"][0, 0])
    bhT = bhT.at[1, 0].set(params["bv"][0, 0])

    return dict(w1=w1, b1=b1, w2=w2, b2=b2, whT=whT, bhT=bhT,
                obs_dim=obs_dim, hidden=hidden)


def _choose_batch_tile(B, batch_tile):
    """Returns (TB, B_pad).  Small batches: one full-array tile (block == array dims
    is always legal).  Larger batches: >=2 tiles (keeps both v7x TensorCores busy)
    with TB a multiple of 128 so the lane-dense (NH_ROWS, TB) out block is legal."""
    if B <= 128:
        tb = max(8, _round_up(B, 8))
        return tb, tb
    tb = min(_round_up(batch_tile, 128), _round_up(-(-B // 2), 128))
    tb = max(tb, 128)
    return tb, _round_up(B, tb)


def dual_head_actor_critic(obs, prep, *, batch_tile=1024):
    """obs: (B, obs_dim) f32.  Returns (gamma, value), each (B, 1) f32."""
    B, obs_dim = obs.shape
    hidden = prep["hidden"]
    assert obs_dim == prep["obs_dim"]

    TB, B_pad = _choose_batch_tile(B, batch_tile)
    n_tiles = B_pad // TB

    obs = obs.astype(jnp.float32)
    if B_pad != B:  # pad only the batch dim (no lane padding, no dtype-cast pass)
        obs = jnp.pad(obs, ((0, B_pad - B), (0, 0)))

    out = pl.pallas_call(
        _dual_head_kernel,
        out_shape=jax.ShapeDtypeStruct((NH_ROWS, B_pad), jnp.float32),
        grid_spec=pltpu.PrefetchScalarGridSpec(
            num_scalar_prefetch=0,
            grid=(n_tiles,),
            in_specs=[
                pl.BlockSpec((TB, obs_dim), lambda i: (i, 0)),      # obs tile (pipelined)
                pl.BlockSpec((obs_dim, hidden), lambda i: (0, 0)),  # w1 (resident)
                pl.BlockSpec((1, hidden), lambda i: (0, 0)),        # b1
                pl.BlockSpec((hidden, hidden), lambda i: (0, 0)),   # w2 (resident)
                pl.BlockSpec((1, hidden), lambda i: (0, 0)),        # b2
                pl.BlockSpec((NH_ROWS, hidden), lambda i: (0, 0)),  # fused head weight^T
                pl.BlockSpec((NH_ROWS, 1), lambda i: (0, 0)),       # fused head bias^T
            ],
            out_specs=pl.BlockSpec((NH_ROWS, TB), lambda i: (0, i)),
        ),
        compiler_params=pltpu.CompilerParams(
            dimension_semantics=("parallel",)),
    )(obs, prep["w1"], prep["b1"], prep["w2"], prep["b2"],
      prep["whT"], prep["bhT"])

    gamma = out[0, :B][:, None]
    value = out[1, :B][:, None]
    return gamma, value


# ------------------------------------------------------------------------ init & refs
def init_params(key, obs_dim, hidden):
    """Deterministic init mimicking torch.nn.Linear default U(-1/sqrt(fan_in), +)."""
    ks = jax.random.split(key, 8)

    def linear(kw, kb, fan_in, fan_out):
        bound = 1.0 / math.sqrt(fan_in)
        w = jax.random.uniform(kw, (fan_in, fan_out), jnp.float32, -bound, bound)
        b = jax.random.uniform(kb, (1, fan_out), jnp.float32, -bound, bound)
        return w, b

    w1, b1 = linear(ks[0], ks[1], obs_dim, hidden)
    w2, b2 = linear(ks[2], ks[3], hidden, hidden)
    wg, bg = linear(ks[4], ks[5], hidden, 1)
    wv, bv = linear(ks[6], ks[7], hidden, 1)
    return dict(w1=w1, b1=b1, w2=w2, b2=b2, wg=wg, bg=bg, wv=wv, bv=bv)


def reference_forward_bf16(obs, p):
    """Pure-JAX reference with the same bf16-input / f32-accumulate quantization."""
    q = lambda x: x.astype(jnp.bfloat16)
    f32 = jnp.float32
    h1 = jnp.maximum(jnp.dot(q(obs), q(p["w1"]), preferred_element_type=f32)
                     + p["b1"], 0.0)
    h2 = jnp.maximum(jnp.dot(q(h1), q(p["w2"]), preferred_element_type=f32)
                     + p["b2"], 0.0)
    wh = q(jnp.concatenate([p["wg"], p["wv"]], axis=1))
    bh = jnp.concatenate([p["bg"], p["bv"]], axis=1)
    head = jnp.dot(q(h2), wh, preferred_element_type=f32) + bh
    return jax.nn.sigmoid(head[:, 0:1]), head[:, 1:2]


def reference_forward_f32(obs, p):
    """Exact f32 math matching the PyTorch module."""
    z = jnp.maximum(obs @ p["w1"] + p["b1"], 0.0)
    z = jnp.maximum(z @ p["w2"] + p["b2"], 0.0)
    gamma = jax.nn.sigmoid(z @ p["wg"] + p["bg"])
    value = z @ p["wv"] + p["bv"]
    return gamma, value


# ---------------------------------------------------------------------------- driver
if __name__ == "__main__":
    obs_dim, hidden = 32, 32

    key = jax.random.PRNGKey(0)
    k_obs, k_params, k_obs2 = jax.random.split(key, 3)
    params = init_params(k_params, obs_dim, hidden)
    prep = prepare_params(params)

    # --- small demo batch (single grid tile, block == full array dims) ----------
    B = 8
    obs = jax.random.normal(k_obs, (B, obs_dim), jnp.float32)
    gamma, value = jax.block_until_ready(dual_head_actor_critic(obs, prep))

    assert gamma.shape == (B, 1) and value.shape == (B, 1)
    g_bf, v_bf = reference_forward_bf16(obs, params)
    assert jnp.allclose(gamma, g_bf, atol=5e-3, rtol=5e-3)
    assert jnp.allclose(value, v_bf, atol=5e-3, rtol=5e-3)
    # loose check against the exact f32 PyTorch-equivalent math (bf16 weight noise)
    g_f32, v_f32 = reference_forward_f32(obs, params)
    assert jnp.allclose(gamma, g_f32, atol=5e-2, rtol=5e-2)
    assert jnp.allclose(value, v_f32, atol=5e-2, rtol=5e-2)

    # --- larger ragged batch: batch padding + 2 "parallel" grid tiles ----------
    B2 = 300
    obs2 = jax.random.normal(k_obs2, (B2, obs_dim), jnp.float32)
    gamma2, value2 = jax.block_until_ready(dual_head_actor_critic(obs2, prep))
    assert gamma2.shape == (B2, 1) and value2.shape == (B2, 1)
    g2_bf, v2_bf = reference_forward_bf16(obs2, params)
    assert jnp.allclose(gamma2, g2_bf, atol=5e-3, rtol=5e-3)
    assert jnp.allclose(value2, v2_bf, atol=5e-3, rtol=5e-3)

    print("KERNEL_OK")
</pallas_src>

<mosaic_0001>
module attributes {stable_mosaic.version = 11 : i64} {
  func.func @_dual_head_kernel(%arg0: i32, %arg1: memref<8x32xf32, #tpu.memory_space<vmem>>, %arg2: memref<32x32xbf16, #tpu.memory_space<vmem>>, %arg3: memref<1x32xf32, #tpu.memory_space<vmem>>, %arg4: memref<32x32xbf16, #tpu.memory_space<vmem>>, %arg5: memref<1x32xf32, #tpu.memory_space<vmem>>, %arg6: memref<8x32xbf16, #tpu.memory_space<vmem>>, %arg7: memref<8x1xf32, #tpu.memory_space<vmem>>, %arg8: memref<8x8xf32, #tpu.memory_space<vmem>>) attributes {dimension_semantics = [#tpu.dimension_semantics<parallel>], iteration_bounds = array<i64: 1>, scalar_prefetch = 0 : i64, scratch_operands = 0 : i64, tpu.core_type = #tpu.core_type<tc>, window_params = [{transform_indices = @transform_0, window_bounds = array<i64: 8, 32>}, {pipeline_mode = #tpu.pipeline_mode<synchronous>, transform_indices = @transform_1, window_bounds = array<i64: 32, 32>}, {pipeline_mode = #tpu.pipeline_mode<synchronous>, transform_indices = @transform_2, window_bounds = array<i64: 1, 32>}, {pipeline_mode = #tpu.pipeline_mode<synchronous>, transform_indices = @transform_3, window_bounds = array<i64: 32, 32>}, {pipeline_mode = #tpu.pipeline_mode<synchronous>, transform_indices = @transform_4, window_bounds = array<i64: 1, 32>}, {pipeline_mode = #tpu.pipeline_mode<synchronous>, transform_indices = @transform_5, window_bounds = array<i64: 8, 32>}, {pipeline_mode = #tpu.pipeline_mode<synchronous>, transform_indices = @transform_6, window_bounds = array<i64: 8, 1>}, {transform_indices = @transform_7, window_bounds = array<i64: 8, 8>}]} {
    %c0 = arith.constant 0 : index
    %c0_0 = arith.constant 0 : index
    %0 = vector.load %arg1[%c0, %c0_0] : memref<8x32xf32, #tpu.memory_space<vmem>>, vector<8x32xf32>
    %1 = arith.truncf %0 : vector<8x32xf32> to vector<8x32xbf16>
    %c0_1 = arith.constant 0 : index
    %c0_2 = arith.constant 0 : index
    %2 = vector.load %arg2[%c0_1, %c0_2] : memref<32x32xbf16, #tpu.memory_space<vmem>>, vector<32x32xbf16>
    %cst = arith.constant dense<0.000000e+00> : vector<8x32xf32>
    %3 = tpu.matmul %1, %2, %cst {dimension_numbers = #tpu.dot_dimension_numbers<[1], [0], [0], [1], [0, 0, 1, 1], [], []>} : vector<8x32xbf16>, vector<32x32xbf16>, vector<8x32xf32> -> vector<8x32xf32>
    %c0_3 = arith.constant 0 : index
    %c0_4 = arith.constant 0 : index
    %4 = vector.load %arg3[%c0_3, %c0_4] : memref<1x32xf32, #tpu.memory_space<vmem>>, vector<1x32xf32>
    %5 = vector.broadcast %4 : vector<1x32xf32> to vector<8x32xf32>
    %6 = arith.addf %3, %5 : vector<8x32xf32>
    %cst_5 = arith.constant 0.000000e+00 : f32
    %7 = vector.broadcast %cst_5 : f32 to vector<8x32xf32>
    %8 = arith.maximumf %6, %7 : vector<8x32xf32>
    %9 = arith.truncf %8 : vector<8x32xf32> to vector<8x32xbf16>
    %c0_6 = arith.constant 0 : index
    %c0_7 = arith.constant 0 : index
    %10 = vector.load %arg4[%c0_6, %c0_7] : memref<32x32xbf16, #tpu.memory_space<vmem>>, vector<32x32xbf16>
    %cst_8 = arith.constant dense<0.000000e+00> : vector<8x32xf32>
    %11 = tpu.matmul %9, %10, %cst_8 {dimension_numbers = #tpu.dot_dimension_numbers<[1], [0], [0], [1], [0, 0, 1, 1], [], []>} : vector<8x32xbf16>, vector<32x32xbf16>, vector<8x32xf32> -> vector<8x32xf32>
    %c0_9 = arith.constant 0 : index
    %c0_10 = arith.constant 0 : index
    %12 = vector.load %arg5[%c0_9, %c0_10] : memref<1x32xf32, #tpu.memory_space<vmem>>, vector<1x32xf32>
    %13 = vector.broadcast %12 : vector<1x32xf32> to vector<8x32xf32>
    %14 = arith.addf %11, %13 : vector<8x32xf32>
    %cst_11 = arith.constant 0.000000e+00 : f32
    %15 = vector.broadcast %cst_11 : f32 to vector<8x32xf32>
    %16 = arith.maximumf %14, %15 : vector<8x32xf32>
    %c0_12 = arith.constant 0 : index
    %c0_13 = arith.constant 0 : index
    %17 = vector.load %arg6[%c0_12, %c0_13] : memref<8x32xbf16, #tpu.memory_space<vmem>>, vector<8x32xbf16>
    %18 = arith.truncf %16 : vector<8x32xf32> to vector<8x32xbf16>
    %cst_14 = arith.constant dense<0.000000e+00> : vector<8x8xf32>
    %19 = tpu.matmul %17, %18, %cst_14 {dimension_numbers = #tpu.dot_dimension_numbers<[1], [1], [0], [0], [0, 0, 1, 0], [], []>} : vector<8x32xbf16>, vector<8x32xbf16>, vector<8x8xf32> -> vector<8x8xf32>
    %c0_15 = arith.constant 0 : index
    %c0_16 = arith.constant 0 : index
    %20 = vector.load %arg7[%c0_15, %c0_16] : memref<8x1xf32, #tpu.memory_space<vmem>>, vector<8x1xf32>
    %21 = vector.broadcast %20 : vector<8x1xf32> to vector<8x8xf32>
    %22 = arith.addf %19, %21 : vector<8x8xf32>
    %23 = vector.extract_strided_slice %22 {offsets = [0, 0], sizes = [1, 8], strides = [1, 1]} : vector<8x8xf32> to vector<1x8xf32>
    %24 = arith.negf %23 : vector<1x8xf32>
    %25 = math.exp %24 : vector<1x8xf32>
    %cst_17 = arith.constant 1.000000e+00 : f32
    %26 = vector.broadcast %cst_17 : f32 to vector<1x8xf32>
    %27 = arith.addf %26, %25 : vector<1x8xf32>
    %28 = arith.divf %26, %27 : vector<1x8xf32>
    %29 = vector.extract_strided_slice %22 {offsets = [1, 0], sizes = [7, 8], strides = [1, 1]} : vector<8x8xf32> to vector<7x8xf32>
    %30 = tpu.concatenate %28, %29 in 0 : vector<1x8xf32>, vector<7x8xf32> -> vector<8x8xf32>
    %c0_18 = arith.constant 0 : index
    %c0_19 = arith.constant 0 : index
    %31 = vector.load %arg8[%c0_18, %c0_19] : memref<8x8xf32, #tpu.memory_space<vmem>>, vector<8x8xf32>
    tpu.vector_store %arg8[%c0_18, %c0_19], %30 {strides = array<i32>} : memref<8x8xf32, #tpu.memory_space<vmem>>, vector<8x8xf32>,
    return
  }
  func.func @transform_0(%arg0: i32) -> (i32, i32) {
    %c0_i32 = arith.constant 0 : i32
    %c0_i32_0 = arith.constant 0 : i32
    return %arg0, %c0_i32 : i32, i32
  }
  func.func @transform_1(%arg0: i32) -> (i32, i32) {
    %c0_i32 = arith.constant 0 : i32
    %c0_i32_0 = arith.constant 0 : i32
    %c0_i32_1 = arith.constant 0 : i32
    return %c0_i32, %c0_i32_0 : i32, i32
  }
  func.func @transform_2(%arg0: i32) -> (i32, i32) {
    %c0_i32 = arith.constant 0 : i32
    %c0_i32_0 = arith.constant 0 : i32
    %c0_i32_1 = arith.constant 0 : i32
    return %c0_i32, %c0_i32_0 : i32, i32
  }
  func.func @transform_3(%arg0: i32) -> (i32, i32) {
    %c0_i32 = arith.constant 0 : i32
    %c0_i32_0 = arith.constant 0 : i32
    %c0_i32_1 = arith.constant 0 : i32
    return %c0_i32, %c0_i32_0 : i32, i32
  }
  func.func @transform_4(%arg0: i32) -> (i32, i32) {
    %c0_i32 = arith.constant 0 : i32
    %c0_i32_0 = arith.constant 0 : i32
    %c0_i32_1 = arith.constant 0 : i32
    return %c0_i32, %c0_i32_0 : i32, i32
  }
  func.func @transform_5(%arg0: i32) -> (i32, i32) {
    %c0_i32 = arith.constant 0 : i32
    %c0_i32_0 = arith.constant 0 : i32
    %c0_i32_1 = arith.constant 0 : i32
    return %c0_i32, %c0_i32_0 : i32, i32
  }
  func.func @transform_6(%arg0: i32) -> (i32, i32) {
    %c0_i32 = arith.constant 0 : i32
    %c0_i32_0 = arith.constant 0 : i32
    %c0_i32_1 = arith.constant 0 : i32
    return %c0_i32, %c0_i32_0 : i32, i32
  }
  func.func @transform_7(%arg0: i32) -> (i32, i32) {
    %c0_i32 = arith.constant 0 : i32
    %c0_i32_0 = arith.constant 0 : i32
    return %c0_i32, %arg0 : i32, i32
  }
}

</mosaic_0001>

<bundles_post_ra>
// kernel: tpu_custom_call.1
= control target key start
LH: loop header
LB: loop body
LE: loop exit
PB: predicated region body
PF: predicated region fallthrough
CT: control target
= control target key end

     0   :  { %12 = vsyncpa [#allocation3], 0  ;;  %s551_s0 = inlined_call_operand.hbm [shape: f32[8,32], index: 0, kind: input, shape index: {}]   ;;  %s552_s1 = inlined_call_operand.hbm [shape: bf16[32,32], index: 1, kind: input, shape index: {}]   ;;  %s553_s2 = inlined_call_operand.hbm [shape: f32[1,32], index: 2, kind: input, shape index: {}]   ;;  %s554_s3 = inlined_call_operand.vmem [shape: bf16[32,32], index: 3, kind: input, shape index: {}]   ;;  %s555_s4 = inlined_call_operand.vmem [shape: f32[1,32], index: 4, kind: input, shape index: {}]   ;;  %s556_s5 = inlined_call_operand.vmem [shape: bf16[8,32], index: 5, kind: input, shape index: {}]   ;;  %s557_s6 = inlined_call_operand.vmem [shape: f32[8,1], index: 6, kind: input, shape index: {}]   ;;  %s558_s7 = inlined_call_operand.hbm [shape: f32[8,8], index: 7, kind: output, shape index: {}]  }
   0x1   :  { %13 = vsyncpa [#allocation6], 0 }
   0x2   :  { %14 = vsyncpa [#allocation4], 0  ;;  %s435_s24 = smov [#allocation5]   ;;  %s341_s28 = scalar_lea.hbm %s552_s1, 256 }
   0x3   :  { %s30_s25 = sshll.u32 %s435_s24, 4  ;;  %p342_p0 = scmp.ne.s32.totalorder %s552_s1, %s341_s28  ;;  %s31_s25 = int_to_ptr.vmem [resolvable:$true] %s30_s25 }
   0x4   :  { %p345_p1 = scmp.lt.u32.totalorder %s341_s28, %s552_s1 }
   0x6   :  { %p347_p2 = pnand %p345_p1, %p342_p0 }
   0x8   :  { %350 = shalt.err (!%p347_p2)
}
   0x9   :  { %s351_s10 = scalar_lea.vmem %s31_s25, 256  ;;  %p356_p4 = scmp.lt.s32.totalorder %s31_s25, %s31_s25 }
   0xa   :  { %p352_p3 = scmp.ne.s32.totalorder %s31_s25, %s351_s10  ;;  %p357_p5 = scmp.lt.s32.totalorder %s351_s10, %s351_s10 }
   0xc   :  { %p358_p6 = por %p357_p5, %p356_p4 }
   0xe   :  { %p359_p7 = pnand %p358_p6, %p352_p3 }
  0x10   :  { %362 = shalt.err (!%p359_p7)
}
  0x11   :  { %s436_s11 = smov 64   ;;  %s437_s12 = smov 4  }
  0x12   :  { %36 = dma.hbm_to_vmem [thread:$0]  %s552_s1, 256, %s31_s25, [#allocation6], %s436_s11, %s436_s11, %s437_s12  }
  0x13   :  { %s438_s15 = smov [#allocation2]   ;;  %s439_s17 = smov [#allocation7]  }
  0x14   :  { %s21_s16 = sshll.u32 %s438_s15, 4  ;;  %s43_s18 = sshll.u32 %s439_s17, 4  ;;  %s22_s16 = int_to_ptr.vmem [resolvable:$true] %s21_s16  ;;  %s44_s18 = int_to_ptr.vmem [resolvable:$true] %s43_s18 }
  0x15   :  { %s363_s21 = scalar_lea.hbm %s551_s0, 128 }
  0x16   :  { %p364_p8 = scmp.ne.s32.totalorder %s551_s0, %s363_s21  ;;  %p367_p9 = scmp.lt.u32.totalorder %s363_s21, %s551_s0 }
  0x18   :  { %p369_p10 = pnand %p367_p9, %p364_p8 }
  0x1a   :  { %372 = shalt.err (!%p369_p10)
}
  0x1b   :  { %s373_s1 = scalar_lea.vmem %s22_s16, 128  ;;  %p378_p12 = scmp.lt.s32.totalorder %s22_s16, %s22_s16 }
  0x1c   :  { %p374_p11 = scmp.ne.s32.totalorder %s22_s16, %s373_s1  ;;  %p379_p13 = scmp.lt.s32.totalorder %s373_s1, %s373_s1 }
  0x1e   :  { %p380_p0 = por %p379_p13, %p378_p12 }
  0x20   :  { %p381_p1 = pnand %p380_p0, %p374_p11 }
  0x22   :  { %384 = shalt.err (!%p381_p1)
}
  0x23   :  { %24 = dma.hbm_to_vmem [thread:$0]  %s551_s0, 128, %s22_s16, [#allocation3]  }
  0x24   :  { %s385_s30 = scalar_lea.hbm %s553_s2, 16 }
  0x25   :  { %p386_p2 = scmp.ne.s32.totalorder %s553_s2, %s385_s30  ;;  %p389_p3 = scmp.lt.u32.totalorder %s385_s30, %s553_s2 }
  0x27   :  { %p391_p4 = pnand %p389_p3, %p386_p2 }
  0x29   :  { %394 = shalt.err (!%p391_p4)
}
  0x2a   :  { %s395_s12 = scalar_lea.vmem %s44_s18, 16  ;;  %s399_s13 = scalar_lea.vmem %s44_s18, 32 }
  0x2b   :  { %p396_p5 = scmp.ne.s32.totalorder %s44_s18, %s395_s12  ;;  %p400_p6 = scmp.lt.s32.totalorder %s44_s18, %s44_s18 }
  0x2c   :  { %p401_p7 = scmp.lt.s32.totalorder %s399_s13, %s395_s12 }
  0x2e   :  { %p402_p8 = por %p401_p7, %p400_p6 }
  0x30   :  { %p403_p9 = pnand %p402_p8, %p396_p5 }
  0x32   :  { %406 = shalt.err (!%p403_p9)
}
  0x33   :  { %46 = dma.hbm_to_vmem [thread:$0]  %s553_s2, 16, %s44_s18, [#allocation6]  }
  0x34   :  { %429 = dma.done.wait [#allocation3], 128  }
  0x35   :  { %430 = vsyncadd [#allocation3], 4294967168 }
  0x36   :  { %431 = dma.done.wait [#allocation6], 272  }
  0x37   :  { %432 = vsyncadd [#allocation6], 4294967024  ;;  %v440_v0 = vmov 0.0   ;;  %vm441_vm0 = vmmov 0   ;;  %v333_v1 = vld [vmem:[#allocation5] sm:$0xff]   ;;  %v334_v2 = vld [vmem:[#allocation5 + $0x8] sm:$0xff]  }
  0x38   :  { %301 = vmatprep.subr.bf16.mxu0 %v440_v0  ;;  %305 = vmatprep.mubr.msk.bf16.mxu0 %vm441_vm0, %v440_v0  ;;  %v65_v3 = vld [vmem:[#allocation2] sm:$0xff]  ;;  %vm90_vm1 = vcmask 261120   ;;  %v336_v6 = vld [vmem:[%s554_s3 + $0x8] sm:$0xff]   ;;  %v283_v7 = vld [vmem:[#allocation7] ss:$0 sm:$0xff]  ;;  %v442_v16 = vmov 0  }
  0x39   :  { %309 = vmatprep.subr.bf16.mxu1 %v440_v0  ;;  %313 = vmatprep.mubr.msk.bf16.mxu1 %vm441_vm0, %v440_v0  ;;  %v66_v4 = vpack.c.bf16 %v65_v3, %v65_v3  ;;  %v335_v5 = vld [vmem:[%s554_s3] sm:$0xff]   ;;  %vm263_vm2 = vcmask 1040384   ;;  %vm265_vm3 = vcmask 64512  }
  0x3a   :  { %302 = vmatpush3.bf16.msra.mxu0 %v333_v1  ;;  %310 = vmatpush3.bf16.msra.mxu1 %v335_v5  ;;  %v205_v15 = vld [vmem:[%s557_s6] sm:$0xff] }
  0x3b   :  { %303 = vmatprep.subr.bf16.mxu0 %v440_v0  ;;  %311 = vmatprep.subr.bf16.mxu1 %v440_v0  ;;  %v287_v17 = vld [vmem:[%s555_s4] ss:$0 sm:$0xff]  ;;  %s443_s4 = smov [#allocation8]  }
  0x3c   :  { %332 = vset.pattern.permute.xlu0 %v442_v16  ;;  %v203_v26 = vld [vmem:[%s556_s5] sm:$0xf]  ;;  %s273_s6 = sshll.u32 %s443_s4, 4  ;;  %s274_s6 = int_to_ptr.vmem [resolvable:$true] %s273_s6 }
  0x3d   :  { %208 = vperm.xlu0 %332, %v205_v15   ;;  %s407_s5 = scalar_lea.vmem %s274_s6, 128  ;;  %p412_p11 = scmp.lt.s32.totalorder %s274_s6, %s274_s6 }
  0x3e   :  { %304 = vmatpush3.bf16.msra.mxu0 %v334_v2  ;;  %312 = vmatpush3.bf16.msra.mxu1 %v336_v6  ;;  %p408_p10 = scmp.ne.s32.totalorder %s274_s6, %s407_s5  ;;  %p413_p12 = scmp.lt.s32.totalorder %s407_s5, %s407_s5 }
  0x3f   :  { %317 = vmatprep.subr.bf16.mxu0 %v440_v0 }
  0x40   :  { %p414_p13 = por %p413_p12, %p412_p11 }
  0x41   :  { %306 = vmatmul.mubr.msk.bf16.vlgmr.msra.gmra.mrb[0].mxu0 %vm90_vm1, %v66_v4 }
  0x42   :  { %319 = vmatprep.mubr.msk.bf16.mxu0 %vm441_vm0, %v440_v0  ;;  %p415_p0 = pnand %p414_p13, %p408_p10 }
  0xbc   :  { %v209_v27 = vpop.permute.xlu0 %208 }
 0x114   :  { %v128_v8 = vpop.f32.mrb[0].mxu0 }
 0x115   :  { %v129_v9 = vadd.f32 %v283_v7, %v128_v8  ;;  %v307_v10 = vpop.f32.mrb[1].mxu0 }
 0x116   :  { %v131_v11 = vpop.f32.mrb[2].mxu0 }
 0x117   :  { %v134_v12 = vmax.f32 %v129_v9, 0.0  ;;  %v308_v13 = vpop.f32.mrb[3].mxu0 }
 0x119   :  { %v135_v14 = vpack.c.bf16 %v134_v12, %v134_v12 }
 0x11b   :  { %314 = vmatmul.mubr.msk.bf16.vlgmr.msra.gmra.mrb[0].mxu1 %vm90_vm1, %v135_v14 }
 0x1ee   :  { %v196_v18 = vpop.f32.mrb[0].mxu1 }
 0x1ef   :  { %v197_v19 = vadd.f32 %v287_v17, %v196_v18  ;;  %v315_v20 = vpop.f32.mrb[1].mxu1 }
 0x1f0   :  { %v199_v21 = vpop.f32.mrb[2].mxu1 }
 0x1f1   :  { %v202_v22 = vmax.f32 %v197_v19, 0.0  ;;  %v316_v23 = vpop.f32.mrb[3].mxu1 }
 0x1f3   :  { %v204_v24 = vpack.c.bf16 %v202_v22, %v202_v22 }
 0x1f5   :  { %v215_v25 = vsel %vm90_vm1, %v204_v24, 0 }
 0x1f6   :  { %318 = vmatpush3.bf16.xpose.msra.mxu0 %v215_v25 }
 0x1fd   :  { %320 = vmatmul.mubr.msk.bf16.vlgmr.msra.gmra.mrb[4].mxu0 %vm90_vm1, %v203_v26 }
 0x2d0   :  { %v251_v28 = vpop.f32.mrb[4].mxu0 }
 0x2d1   :  { %v252_v29 = vadd.f32 %v251_v28, %v209_v27  ;;  %v321_v30 = vpop.f32.mrb[5].mxu0 }
 0x2d2   :  { %v254_v31 = vpop.f32.mrb[6].mxu0 }
 0x2d3   :  { %v292_v32 = vmul.f32 -1.442695, %v252_v29  ;;  %v322_v33 = vpop.f32.mrb[7].mxu0 }
 0x2d5   :  { %337 = vpow2.f32 %v292_v32 }
 0x2df   :  { %v338_v34 = vpop.eup %337 }
 0x2e0   :  { %v260_v35 = vadd.f32 1.0, %v338_v34 }
 0x2e2   :  { %339 = vrcp.f32 %v260_v35 }
 0x2ec   :  { %v340_v36 = vpop.eup %339 }
 0x2ed   :  { %v264_v37 = vsel %vm263_vm2, %v340_v36, %v252_v29 }
 0x2ee   :  { %266 = vst.msk [vmem:[#allocation8] sm:$0xff] %vm265_vm3, %v264_v37 }
 0x2ef   :  { %418 = shalt.err (!%p415_p0)
}
 0x2f0   :  { %s419_s26 = scalar_lea.hbm %s558_s7, 128 }
 0x2f1   :  { %p420_p1 = scmp.ne.s32.totalorder %s558_s7, %s419_s26  ;;  %p423_p2 = scmp.lt.u32.totalorder %s419_s26, %s558_s7 }
 0x2f3   :  { %p425_p3 = pnand %p423_p2, %p420_p1 }
 0x2f5   :  { %428 = shalt.err (!%p425_p3)
}
 0x2f6   :  { %276 = dma.vmem_to_hbm [thread:$0]  %s274_s6, 128, %s558_s7, [#allocation4]  }
 0x2f7   :  { %433 = dma.done.wait [#allocation4], 128  }
 0x2f8   :  { %434 = vsyncadd [#allocation4], 4294967168 }
 0x2f9   :  { %280 = vsyncpa [#allocation3], 1 }
 0x2fa   :  { %281 = vsyncpa [#allocation6], 1 }
 0x2fb   :  { %282 = vsyncpa [#allocation4], 1 }

</bundles_post_ra>
